<compile_context>
chip_gen: v7x
topology: tpu7x:2x2x1
jax: 0.10.0
libtpu: 0.0.40
codegen_flags: <defaults>
</compile_context>

<pallas_src>
import jax
import jax.numpy as jnp
from jax.experimental import pallas as pl
from jax.experimental.pallas import tpu as pltpu

IN_FEATURES = 7
OUT_FEATURES = 3

MAX_TILE_B = 16384                    # rows per grid step (multiple of 8)
VMEM_LIMIT_BYTES = 48 * 1024 * 1024   # ~32 MiB double-buffered blocks + headroom
SMALL_BATCH_XLA_MAX = 4096            # below this, fused XLA beats any pallas_call


def _round_up(n, m):
    return ((n + m - 1) // m) * m


def _linear_relu_kernel(x_ref, wt_ref, b_ref, o_ref):
    """x_ref: (tile_b, 7), wt_ref: (7, 3), b_ref: (1, 3), o_ref: (tile_b, 3)."""
    # MXU matmul (mem-bound op, MXU slot has plenty of slack); bias + ReLU fused
    # into one VALU pass over the (tile_b, 3) result tile.
    y = jnp.dot(x_ref[...], wt_ref[...], preferred_element_type=jnp.float32)
    o_ref[...] = jnp.maximum(y + b_ref[...], 0.0).astype(o_ref.dtype)


def logistic_regression_forward(x, w, b, *, tile_b=None, use_pallas=None):
    """x: (B, 7) f32, w: (3, 7) f32 (PyTorch layout), b: (3,) f32 -> (B, 3) f32."""
    B = x.shape[0]
    if B == 0:  # latent edge case flagged in review
        return jnp.zeros((0, OUT_FEATURES), x.dtype)

    if use_pallas is None:
        use_pallas = B > SMALL_BATCH_XLA_MAX
    if not use_pallas:
        # Fused XLA path for DQN-style small batches: identical numerics.
        return jnp.maximum(x @ w.T + b[None, :], 0.0).astype(x.dtype)

    if tile_b is None:
        # >= 2 grid steps whenever B > 8 (megacore sharding + pipeline overlap),
        # capped by the VMEM budget.
        tile_b = min(MAX_TILE_B, _round_up(pl.cdiv(B, 2), 8))
    tile_b = max(8, _round_up(tile_b, 8))
    num_tiles = pl.cdiv(B, tile_b)

    w_t = w.T                                  # (7, 3); tiny, negligible cost
    b2 = b.reshape(1, OUT_FEATURES)            # (1, 3)

    return pl.pallas_call(
        _linear_relu_kernel,
        out_shape=jax.ShapeDtypeStruct((B, OUT_FEATURES), x.dtype),
        grid=(num_tiles,),
        in_specs=[
            # Natural (B, 7) layout: full minor extent -> contiguous HBM slab,
            # trailing partial block masked by Pallas (no wrapper pad needed).
            pl.BlockSpec((tile_b, IN_FEATURES), lambda i: (i, 0)),
            pl.BlockSpec((IN_FEATURES, OUT_FEATURES), lambda i: (0, 0)),  # W^T resident
            pl.BlockSpec((1, OUT_FEATURES), lambda i: (0, 0)),            # bias resident
        ],
        out_specs=pl.BlockSpec((tile_b, OUT_FEATURES), lambda i: (i, 0)),
        compiler_params=pltpu.CompilerParams(
            dimension_semantics=("parallel",),        # shard batch across TCs (v7x)
            vmem_limit_bytes=VMEM_LIMIT_BYTES,        # large tiles need > 32 MiB scoped
        ),
    )(x, w_t, b2)


def init_params(key):
    # Match nn.Linear default init: U(-1/sqrt(in_features), 1/sqrt(in_features)).
    kw, kb = jax.random.split(key)
    bound = float(IN_FEATURES) ** -0.5
    w = jax.random.uniform(kw, (OUT_FEATURES, IN_FEATURES),
                           minval=-bound, maxval=bound, dtype=jnp.float32)
    b = jax.random.uniform(kb, (OUT_FEATURES,),
                           minval=-bound, maxval=bound, dtype=jnp.float32)
    return w, b


if __name__ == "__main__":
    key = jax.random.PRNGKey(0)
    k_params, k_x1, k_x2 = jax.random.split(key, 3)
    w, b = init_params(k_params)

    def ref_forward(x):
        return jnp.maximum(x @ w.T + b[None, :], 0.0)

    # Tiny batch (B = 8), forced through the Pallas kernel: single block.
    x1 = jax.random.normal(k_x1, (8, IN_FEATURES), dtype=jnp.float32)
    y1 = jax.block_until_ready(logistic_regression_forward(x1, w, b, use_pallas=True))
    assert y1.shape == (8, OUT_FEATURES)
    assert jnp.allclose(y1, ref_forward(x1), atol=1e-5, rtol=1e-5)

    # Non-multiple batch (B = 300), forced through the Pallas kernel:
    # 2 grid steps (tile_b = 152) with a masked partial tail block.
    x2 = jax.random.normal(k_x2, (300, IN_FEATURES), dtype=jnp.float32)
    y2 = jax.block_until_ready(logistic_regression_forward(x2, w, b, use_pallas=True))
    assert y2.shape == (300, OUT_FEATURES)
    assert jnp.allclose(y2, ref_forward(x2), atol=1e-5, rtol=1e-5)

    # Default dispatch (small B -> fused XLA fallback), same numerics.
    y3 = jax.block_until_ready(logistic_regression_forward(x2, w, b))
    assert jnp.allclose(y3, y2, atol=1e-5, rtol=1e-5)

    print("KERNEL_OK")
</pallas_src>

<mosaic_0001>
module attributes {stable_mosaic.version = 11 : i64} {
  func.func @_linear_relu_kernel(%arg0: i32, %arg1: memref<8x7xf32, #tpu.memory_space<vmem>>, %arg2: memref<7x3xf32, #tpu.memory_space<vmem>>, %arg3: memref<1x3xf32, #tpu.memory_space<vmem>>, %arg4: memref<8x3xf32, #tpu.memory_space<vmem>>) attributes {dimension_semantics = [#tpu.dimension_semantics<parallel>], iteration_bounds = array<i64: 1>, scalar_prefetch = 0 : i64, scratch_operands = 0 : i64, tpu.core_type = #tpu.core_type<tc>, window_params = [{transform_indices = @transform_0, window_bounds = array<i64: 8, 7>}, {pipeline_mode = #tpu.pipeline_mode<synchronous>, transform_indices = @transform_1, window_bounds = array<i64: 7, 3>}, {pipeline_mode = #tpu.pipeline_mode<synchronous>, transform_indices = @transform_2, window_bounds = array<i64: 1, 3>}, {transform_indices = @transform_3, window_bounds = array<i64: 8, 3>}]} {
    %c0 = arith.constant 0 : index
    %c0_0 = arith.constant 0 : index
    %0 = vector.load %arg1[%c0, %c0_0] : memref<8x7xf32, #tpu.memory_space<vmem>>, vector<8x7xf32>
    %c0_1 = arith.constant 0 : index
    %c0_2 = arith.constant 0 : index
    %1 = vector.load %arg2[%c0_1, %c0_2] : memref<7x3xf32, #tpu.memory_space<vmem>>, vector<7x3xf32>
    %cst = arith.constant dense<0.000000e+00> : vector<8x3xf32>
    %2 = tpu.matmul %0, %1, %cst {dimension_numbers = #tpu.dot_dimension_numbers<[1], [0], [0], [1], [0, 0, 1, 1], [], []>} : vector<8x7xf32>, vector<7x3xf32>, vector<8x3xf32> -> vector<8x3xf32>
    %c0_3 = arith.constant 0 : index
    %c0_4 = arith.constant 0 : index
    %3 = vector.load %arg3[%c0_3, %c0_4] : memref<1x3xf32, #tpu.memory_space<vmem>>, vector<1x3xf32>
    %4 = vector.broadcast %3 : vector<1x3xf32> to vector<8x3xf32>
    %5 = arith.addf %2, %4 : vector<8x3xf32>
    %cst_5 = arith.constant 0.000000e+00 : f32
    %6 = vector.broadcast %cst_5 : f32 to vector<8x3xf32>
    %7 = arith.maximumf %5, %6 : vector<8x3xf32>
    %c0_6 = arith.constant 0 : index
    %c0_7 = arith.constant 0 : index
    %8 = vector.load %arg4[%c0_6, %c0_7] : memref<8x3xf32, #tpu.memory_space<vmem>>, vector<8x3xf32>
    tpu.vector_store %arg4[%c0_6, %c0_7], %7 {strides = array<i32>} : memref<8x3xf32, #tpu.memory_space<vmem>>, vector<8x3xf32>,
    return
  }
  func.func @transform_0(%arg0: i32) -> (i32, i32) {
    %c0_i32 = arith.constant 0 : i32
    %c0_i32_0 = arith.constant 0 : i32
    return %arg0, %c0_i32 : i32, i32
  }
  func.func @transform_1(%arg0: i32) -> (i32, i32) {
    %c0_i32 = arith.constant 0 : i32
    %c0_i32_0 = arith.constant 0 : i32
    %c0_i32_1 = arith.constant 0 : i32
    return %c0_i32, %c0_i32_0 : i32, i32
  }
  func.func @transform_2(%arg0: i32) -> (i32, i32) {
    %c0_i32 = arith.constant 0 : i32
    %c0_i32_0 = arith.constant 0 : i32
    %c0_i32_1 = arith.constant 0 : i32
    return %c0_i32, %c0_i32_0 : i32, i32
  }
  func.func @transform_3(%arg0: i32) -> (i32, i32) {
    %c0_i32 = arith.constant 0 : i32
    %c0_i32_0 = arith.constant 0 : i32
    return %arg0, %c0_i32 : i32, i32
  }
}

</mosaic_0001>

<bundles_post_ra>
// kernel: tpu_custom_call.1
= control target key start
LH: loop header
LB: loop body
LE: loop exit
PB: predicated region body
PF: predicated region fallthrough
CT: control target
= control target key end

     0   :  { %vm27_vm0 = vcmask 1046528   ;;  %vm23_vm1 = vcmask 56320   ;;  %v120_v0 = vmov 0.0   ;;  %vm121_vm2 = vmmov 0   ;;  %s154_s1 = inlined_call_operand.vmem [shape: f32[7,3], index: 1, kind: input, shape index: {}]   ;;  %s155_s0 = inlined_call_operand.vmem [shape: f32[8,7], index: 0, kind: input, shape index: {}]   ;;  %s156_s2 = inlined_call_operand.vmem [shape: f32[1,3], index: 2, kind: input, shape index: {}]   ;;  %s157_s3 = inlined_call_operand.vmem [shape: f32[8,3], index: 3, kind: output, shape index: {}]  }
   0x1   :  { %113 = vmatprep.subr.mxu0 %v120_v0  ;;  %v15_v1 = vld [vmem:[%s154_s1] sm:$0x7f]  ;;  %115 = vmatprep.mubr.msk.f32.mxu0 %vm121_vm2, %v120_v0  ;;  %vm102_vm3 = vcmask 23552  }
   0x2   :  { %v14_v2 = vld [vmem:[%s155_s0] sm:$0xff]  ;;  %114 = vmatpush3.msk.msra.mxu0 %vm27_vm0, %v15_v1 }
   0x3   :  { %116 = vmatmul.mubr.msk.f32.vlgmr.msra.gmra.mrb[0].mxu0 %vm23_vm1, %v14_v2  ;;  %v108_v3 = vld [vmem:[%s156_s2] ss:$0 sm:$0xff] }
  0xd6   :  { %v97_v4 = vpop.f32.mrb[0].mxu0 }
  0xd7   :  { %v98_v5 = vadd.f32 %v108_v3, %v97_v4  ;;  %v117_v6 = vpop.f32.mrb[1].mxu0 }
  0xd9   :  { %v101_v7 = vmax.f32 %v98_v5, 0.0 }
  0xdb   :  { %103 = vst.msk [vmem:[%s157_s3] sm:$0xff] %vm102_vm3, %v101_v7 }

</bundles_post_ra>
